<compile_context>
chip_gen: v7x
topology: tpu7x:2x2x1
jax: 0.10.0
libtpu: 0.0.40
codegen_flags: <defaults>
</compile_context>

<pallas_src>
import functools

import jax
import jax.numpy as jnp
from jax.experimental import pallas as pl
from jax.experimental.pallas import tpu as pltpu


def _avg_pool_kernel(*refs, normalize: bool, dims, t_total: int, mask_t: bool):
    """refs = (x_ref_0, ..., x_ref_{n-1}, o_ref, acc_ref).

    x_ref_i: (bb, tt, D_i) VMEM tile of stream i.
    o_ref:   (bb, D) output tile, resident across the time grid axis.
    acc_ref: (bb, D) f32 accumulator scratch.
    """
    *x_refs, o_ref, acc_ref = refs
    t_idx = pl.program_id(1)

    @pl.when(t_idx == 0)
    def _init():
        acc_ref[...] = jnp.zeros_like(acc_ref)

    bb, tt = x_refs[0].shape[0], x_refs[0].shape[1]
    inv_t = jnp.float32(1.0 / t_total)

    # f32 working copies are (bb, tt, D): bounded by the T tiling, not by T.
    xs = [r[...].astype(jnp.float32) for r in x_refs]

    if mask_t:
        # Last time block is partial: zero the padded frames so they contribute
        # nothing to the norm or the temporal sum (and can never inject NaNs
        # from stale VMEM).
        frame = t_idx * tt + jax.lax.broadcasted_iota(jnp.int32, (bb, tt, 1), 1)
        valid = frame < t_total
        xs = [jnp.where(valid, x, 0.0) for x in xs]

    if normalize:
        # F.normalize(x, p=2, dim=-1): x / max(||x||_2, 1e-12).
        # rsqrt(max(sumsq, 1e-24)) == 1 / max(sqrt(sumsq), 1e-12) (sqrt is
        # monotone); rsqrt uses the EUP slot, keeping the VPU free.
        sumsq = jnp.sum(xs[0] * xs[0], axis=-1, keepdims=True)
        for x in xs[1:]:
            sumsq = sumsq + jnp.sum(x * x, axis=-1, keepdims=True)
        w = jax.lax.rsqrt(jnp.maximum(sumsq, jnp.float32(1e-24))) * inv_t  # (bb, tt, 1)
    else:
        w = None

    # Accumulate each stream's contribution straight into its static column
    # slice of the accumulator (no concatenate).
    off = 0
    for x, d in zip(xs, dims):
        if normalize:
            contrib = jnp.sum(x * w, axis=1)            # (bb, D_i)
        else:
            contrib = jnp.sum(x, axis=1) * inv_t        # (bb, D_i)
        acc_ref[:, off:off + d] = acc_ref[:, off:off + d] + contrib
        off += d

    @pl.when(t_idx == pl.num_programs(1) - 1)
    def _finalize():
        o_ref[...] = acc_ref[...].astype(o_ref.dtype)


def _round_up(x, m):
    return ((x + m - 1) // m) * m


def avg_pooling(*videos, normalize: bool = True, block_bytes: int | None = None):
    """Pallas implementation of AvgPooling.forward.

    Args:
      *videos: one or more arrays of shape (B, T, D_i) with identical (B, T).
      normalize: cfg.VIDEO_ENCODER.PARAMS.normalize flag.
      block_bytes: optional per-step VMEM footprint target override.

    Returns:
      (B, D) array with D = sum(D_i): temporal mean of (optionally per-frame
      L2-normalized) concatenated features.
    """
    videos = [jnp.asarray(v) for v in videos]
    B, T = int(videos[0].shape[0]), int(videos[0].shape[1])
    for v in videos:
        assert int(v.shape[0]) == B and int(v.shape[1]) == T, "streams must share (B, T)"
    dims = tuple(int(v.shape[-1]) for v in videos)
    D = sum(dims)
    out_dtype = jnp.result_type(*[v.dtype for v in videos])

    # ---- Per-generation VMEM sizing ---------------------------------------
    try:
        vmem_cap = int(pltpu.get_tpu_info().vmem_capacity_bytes)
    except Exception:  # interpret mode / older jax: assume smallest part (v7x).
        vmem_cap = 64 << 20
    if block_bytes is None:
        # Resident footprint target ~ physical/4 (v7x -> 16 MiB, v5e/v6e -> 24 MiB).
        block_bytes = min(vmem_cap // 4, 24 << 20)
    budget = int(block_bytes)

    in_itemsize = max(jnp.dtype(v.dtype).itemsize for v in videos)
    out_itemsize = jnp.dtype(out_dtype).itemsize
    # Per (row, frame): 2x double-buffered input tile + f32 copy + one f32 temp.
    row_frame_bytes = D * (2 * in_itemsize + 8)
    # Per row (tt-independent): 2x double-buffered output block + f32 accumulator.
    out_row_bytes = D * (2 * out_itemsize + 4)

    # ---- Batch block candidates (multiple of 8, or == B) -------------------
    # Cap bb so B >= 16 always yields >= 2 batch blocks: lets the "parallel"
    # batch axis shard across v7x's two TensorCores.
    if B >= 16:
        bb_cap = min(B, _round_up(-(-B // 2), 8))
    else:
        bb_cap = B
    if B <= 8:
        bb_candidates = [B]
    else:
        cur = bb_cap if bb_cap == B else max(8, (bb_cap // 8) * 8)
        bb_candidates = [cur]
        while cur > 8:
            cur = max(8, ((cur // 2) // 8) * 8)
            bb_candidates.append(cur)

    # ---- Pick (bb, tt) under the budget ------------------------------------
    bb = tt = None
    min_tt = T if T <= 8 else 8
    for cand in bb_candidates:
        avail = budget - cand * out_row_bytes
        if avail <= 0:
            continue
        tt_fit = avail // (cand * row_frame_bytes)
        if tt_fit >= min_tt:
            bb = cand
            tt = T if tt_fit >= T else max(8, (int(tt_fit) // 8) * 8)
            break
    if bb is None:
        # Even the minimum legal tile exceeds the soft budget (very large D,
        # which is never tiled because the norm needs the full feature dim):
        # take the minimum tile and widen the scoped-VMEM limit instead.
        bb = B if B <= 8 else 8
        tt = T if T <= 8 else 8

    grid = (pl.cdiv(B, bb), pl.cdiv(T, tt))
    mask_t = (T % tt) != 0

    # Explicit scoped-VMEM limit (never rely on the 16/32 MiB defaults):
    # ~3/4 of physical, capped at 64 MiB, bumped if the tile estimate needs more.
    est = bb * tt * row_frame_bytes + bb * out_row_bytes + (1 << 20)
    base_limit = min(vmem_cap * 3 // 4, 64 << 20)
    vmem_limit = max(base_limit, min(est * 5 // 4, vmem_cap - (4 << 20)))

    kernel = functools.partial(
        _avg_pool_kernel, normalize=normalize, dims=dims, t_total=T, mask_t=mask_t)

    # Feature dims are never tiled; each D_i block equals the full array extent.
    in_specs = [pl.BlockSpec((bb, tt, d), lambda b, t: (b, t, 0)) for d in dims]
    out_spec = pl.BlockSpec((bb, D), lambda b, t: (b, 0))  # resident across t

    return pl.pallas_call(
        kernel,
        out_shape=jax.ShapeDtypeStruct((B, D), out_dtype),
        grid_spec=pltpu.PrefetchScalarGridSpec(
            num_scalar_prefetch=0,
            grid=grid,
            in_specs=in_specs,
            out_specs=out_spec,
            scratch_shapes=[pltpu.VMEM((bb, D), jnp.float32)],
        ),
        compiler_params=pltpu.CompilerParams(
            dimension_semantics=("parallel", "arbitrary"),
            vmem_limit_bytes=int(vmem_limit),
        ),
    )(*videos)


def _reference(*videos, normalize: bool = True):
    x = jnp.concatenate(videos, axis=-1).astype(jnp.float32)
    if normalize:
        norm = jnp.sqrt(jnp.sum(x * x, axis=-1, keepdims=True))
        x = x / jnp.maximum(norm, 1e-12)
    return jnp.mean(x, axis=1)


if __name__ == "__main__":
    key = jax.random.PRNGKey(0)
    k1, k2, k3, k4 = jax.random.split(key, 4)

    # Small shapes consistent with the forward: two video feature streams.
    B, T = 2, 8
    v1 = jax.random.normal(k1, (B, T, 16), dtype=jnp.float32)
    v2 = jax.random.normal(k2, (B, T, 16), dtype=jnp.float32)

    out = jax.block_until_ready(avg_pooling(v1, v2, normalize=True))
    ref = _reference(v1, v2, normalize=True)
    assert out.shape == (B, 32), out.shape
    assert jnp.allclose(out, ref, atol=1e-5, rtol=1e-5), "mismatch vs reference (normalize)"

    out_nn = jax.block_until_ready(avg_pooling(v1, v2, normalize=False))
    ref_nn = _reference(v1, v2, normalize=False)
    assert jnp.allclose(out_nn, ref_nn, atol=1e-5, rtol=1e-5), "mismatch vs reference (no norm)"

    # Multi-block path: 2 batch blocks (partial last) x 3 time blocks (partial
    # last -> in-kernel time mask), forced via a small per-step budget.
    B2, T2 = 20, 20
    v3 = jax.random.normal(k3, (B2, T2, 16), dtype=jnp.float32)
    v4 = jax.random.normal(k4, (B2, T2, 48), dtype=jnp.float32)
    out2 = jax.block_until_ready(avg_pooling(v3, v4, normalize=True, block_bytes=160 * 1024))
    ref2 = _reference(v3, v4, normalize=True)
    assert out2.shape == (B2, 64), out2.shape
    assert jnp.allclose(out2, ref2, atol=1e-5, rtol=1e-5), "mismatch vs reference (blocked)"

    # bf16 inputs: f32 accumulation in-kernel, bf16 output.
    v5 = v3.astype(jnp.bfloat16)
    v6 = v4.astype(jnp.bfloat16)
    out3 = jax.block_until_ready(avg_pooling(v5, v6, normalize=True, block_bytes=160 * 1024))
    ref3 = _reference(v5, v6, normalize=True)
    assert out3.dtype == jnp.bfloat16
    assert jnp.allclose(out3.astype(jnp.float32), ref3, atol=1e-2, rtol=1e-2), "mismatch (bf16)"

    print("KERNEL_OK")
</pallas_src>

<mosaic_0001>
module attributes {stable_mosaic.version = 11 : i64} {
  func.func @_avg_pool_kernel(%arg0: i32, %arg1: i32, %arg2: memref<2x8x16xf32, #tpu.memory_space<vmem>>, %arg3: memref<2x8x16xf32, #tpu.memory_space<vmem>>, %arg4: memref<2x32xf32, #tpu.memory_space<vmem>>, %arg5: memref<2x32xf32, #tpu.memory_space<vmem>>) attributes {dimension_semantics = [#tpu.dimension_semantics<parallel>, #tpu.dimension_semantics<arbitrary>], iteration_bounds = array<i64: 1, 1>, scalar_prefetch = 0 : i64, scratch_operands = 1 : i64, tpu.core_type = #tpu.core_type<tc>, window_params = [{transform_indices = @transform_0, window_bounds = array<i64: 2, 8, 16>}, {transform_indices = @transform_1, window_bounds = array<i64: 2, 8, 16>}, {transform_indices = @transform_2, window_bounds = array<i64: 2, 32>}]} {
    %c0_i32 = arith.constant 0 : i32
    %0 = arith.cmpi eq, %arg1, %c0_i32 : i32
    %1 = arith.extui %0 : i1 to i32
    %c0_i32_0 = arith.constant 0 : i32
    %2 = arith.cmpi ne, %1, %c0_i32_0 : i32
    scf.if %2 {
      %cst_20 = arith.constant 0.000000e+00 : f32
      %32 = vector.broadcast %cst_20 : f32 to vector<2x32xf32>
      %c0_21 = arith.constant 0 : index
      %c0_22 = arith.constant 0 : index
      %33 = vector.load %arg5[%c0_21, %c0_22] : memref<2x32xf32, #tpu.memory_space<vmem>>, vector<2x32xf32>
      tpu.vector_store %arg5[%c0_21, %c0_22], %32 {strides = array<i32>} : memref<2x32xf32, #tpu.memory_space<vmem>>, vector<2x32xf32>,
    } else {
    }
    %c0 = arith.constant 0 : index
    %c0_1 = arith.constant 0 : index
    %c0_2 = arith.constant 0 : index
    %3 = vector.load %arg2[%c0, %c0_1, %c0_2] : memref<2x8x16xf32, #tpu.memory_space<vmem>>, vector<2x8x16xf32>
    %c0_3 = arith.constant 0 : index
    %c0_4 = arith.constant 0 : index
    %c0_5 = arith.constant 0 : index
    %4 = vector.load %arg3[%c0_3, %c0_4, %c0_5] : memref<2x8x16xf32, #tpu.memory_space<vmem>>, vector<2x8x16xf32>
    %5 = arith.mulf %3, %3 : vector<2x8x16xf32>
    %cst = arith.constant dense<0.000000e+00> : vector<2x8xf32>
    %6 = vector.multi_reduction <add>, %5, %cst [2] : vector<2x8x16xf32> to vector<2x8xf32>
    %7 = vector.shape_cast %6 : vector<2x8xf32> to vector<2x8x1xf32>
    %8 = arith.mulf %4, %4 : vector<2x8x16xf32>
    %cst_6 = arith.constant dense<0.000000e+00> : vector<2x8xf32>
    %9 = vector.multi_reduction <add>, %8, %cst_6 [2] : vector<2x8x16xf32> to vector<2x8xf32>
    %10 = vector.shape_cast %9 : vector<2x8xf32> to vector<2x8x1xf32>
    %11 = arith.addf %7, %10 : vector<2x8x1xf32>
    %cst_7 = arith.constant 1.000000e-24 : f32
    %12 = vector.broadcast %cst_7 : f32 to vector<2x8x1xf32>
    %13 = arith.maximumf %11, %12 : vector<2x8x1xf32>
    %14 = math.rsqrt %13 : vector<2x8x1xf32>
    %cst_8 = arith.constant 1.250000e-01 : f32
    %15 = vector.broadcast %cst_8 : f32 to vector<2x8x1xf32>
    %16 = arith.mulf %14, %15 : vector<2x8x1xf32>
    %17 = vector.broadcast %16 : vector<2x8x1xf32> to vector<2x8x16xf32>
    %18 = arith.mulf %3, %17 : vector<2x8x16xf32>
    %cst_9 = arith.constant dense<0.000000e+00> : vector<2x16xf32>
    %19 = vector.multi_reduction <add>, %18, %cst_9 [1] : vector<2x8x16xf32> to vector<2x16xf32>
    %c0_10 = arith.constant 0 : index
    %c0_11 = arith.constant 0 : index
    %20 = vector.load %arg5[%c0_10, %c0_11] : memref<2x32xf32, #tpu.memory_space<vmem>>, vector<2x16xf32>
    %21 = arith.addf %20, %19 : vector<2x16xf32>
    %c0_12 = arith.constant 0 : index
    %c0_13 = arith.constant 0 : index
    %22 = vector.load %arg5[%c0_12, %c0_13] : memref<2x32xf32, #tpu.memory_space<vmem>>, vector<2x16xf32>
    tpu.vector_store %arg5[%c0_12, %c0_13], %21 {strides = array<i32>} : memref<2x32xf32, #tpu.memory_space<vmem>>, vector<2x16xf32>,
    %23 = vector.broadcast %16 : vector<2x8x1xf32> to vector<2x8x16xf32>
    %24 = arith.mulf %4, %23 : vector<2x8x16xf32>
    %cst_14 = arith.constant dense<0.000000e+00> : vector<2x16xf32>
    %25 = vector.multi_reduction <add>, %24, %cst_14 [1] : vector<2x8x16xf32> to vector<2x16xf32>
    %c0_15 = arith.constant 0 : index
    %c16 = arith.constant 16 : index
    %26 = vector.load %arg5[%c0_15, %c16] : memref<2x32xf32, #tpu.memory_space<vmem>>, vector<2x16xf32>
    %27 = arith.addf %26, %25 : vector<2x16xf32>
    %c0_16 = arith.constant 0 : index
    %c16_17 = arith.constant 16 : index
    %28 = vector.load %arg5[%c0_16, %c16_17] : memref<2x32xf32, #tpu.memory_space<vmem>>, vector<2x16xf32>
    tpu.vector_store %arg5[%c0_16, %c16_17], %27 {strides = array<i32>} : memref<2x32xf32, #tpu.memory_space<vmem>>, vector<2x16xf32>,
    %c0_i32_18 = arith.constant 0 : i32
    %29 = arith.cmpi eq, %arg1, %c0_i32_18 : i32
    %30 = arith.extui %29 : i1 to i32
    %c0_i32_19 = arith.constant 0 : i32
    %31 = arith.cmpi ne, %30, %c0_i32_19 : i32
    scf.if %31 {
      %c0_20 = arith.constant 0 : index
      %c0_21 = arith.constant 0 : index
      %32 = vector.load %arg5[%c0_20, %c0_21] : memref<2x32xf32, #tpu.memory_space<vmem>>, vector<2x32xf32>
      %c0_22 = arith.constant 0 : index
      %c0_23 = arith.constant 0 : index
      %33 = vector.load %arg4[%c0_22, %c0_23] : memref<2x32xf32, #tpu.memory_space<vmem>>, vector<2x32xf32>
      tpu.vector_store %arg4[%c0_22, %c0_23], %32 {strides = array<i32>} : memref<2x32xf32, #tpu.memory_space<vmem>>, vector<2x32xf32>,
    } else {
    }
    return
  }
  func.func @transform_0(%arg0: i32, %arg1: i32) -> (i32, i32, i32) {
    %c0_i32 = arith.constant 0 : i32
    %c0_i32_0 = arith.constant 0 : i32
    return %arg0, %arg1, %c0_i32 : i32, i32, i32
  }
  func.func @transform_1(%arg0: i32, %arg1: i32) -> (i32, i32, i32) {
    %c0_i32 = arith.constant 0 : i32
    %c0_i32_0 = arith.constant 0 : i32
    return %arg0, %arg1, %c0_i32 : i32, i32, i32
  }
  func.func @transform_2(%arg0: i32, %arg1: i32) -> (i32, i32) {
    %c0_i32 = arith.constant 0 : i32
    %c0_i32_0 = arith.constant 0 : i32
    return %arg0, %c0_i32 : i32, i32
  }
}

</mosaic_0001>

<bundles_post_ra>
// kernel: tpu_custom_call.1
= control target key start
LH: loop header
LB: loop body
LE: loop exit
PB: predicated region body
PF: predicated region fallthrough
CT: control target
= control target key end

     0   :  { %7 = vsyncpa [#allocation4], 0  ;;  %s299_s0 = inlined_call_operand.hbm [shape: f32[2,8,16], index: 0, kind: input, shape index: {}]   ;;  %s300_s1 = inlined_call_operand.hbm [shape: f32[2,8,16], index: 1, kind: input, shape index: {}]   ;;  %s301_s2 = inlined_call_operand.hbm [shape: f32[2,32], index: 2, kind: output, shape index: {}]  }
   0x1   :  { %8 = vsyncpa [#allocation7], 0 }
   0x2   :  { %9 = vsyncpa [#allocation5], 0  ;;  %s231_s9 = smov [#allocation3]   ;;  %s159_s13 = scalar_lea.hbm %s299_s0, 256 }
   0x3   :  { %s15_s10 = sshll.u32 %s231_s9, 4  ;;  %p160_p0 = scmp.ne.s32.totalorder %s299_s0, %s159_s13  ;;  %s16_s10 = int_to_ptr.vmem [resolvable:$true] %s15_s10 }
   0x4   :  { %p163_p1 = scmp.lt.u32.totalorder %s159_s13, %s299_s0 }
   0x6   :  { %p165_p2 = pnand %p163_p1, %p160_p0 }
   0x8   :  { %168 = shalt.err (!%p165_p2)
}
   0x9   :  { %s169_s18 = scalar_lea.vmem %s16_s10, 256  ;;  %p174_p4 = scmp.lt.s32.totalorder %s16_s10, %s16_s10 }
   0xa   :  { %p170_p3 = scmp.ne.s32.totalorder %s16_s10, %s169_s18  ;;  %p175_p5 = scmp.lt.s32.totalorder %s169_s18, %s169_s18 }
   0xc   :  { %p176_p6 = por %p175_p5, %p174_p4 }
   0xe   :  { %p177_p7 = pnand %p176_p6, %p170_p3 }
  0x10   :  { %180 = shalt.err (!%p177_p7)
}
  0x11   :  { %s232_s19 = smov 128   ;;  %s233_s20 = smov 8  }
  0x12   :  { %21 = dma.hbm_to_vmem [thread:$0]  %s299_s0, 256, %s16_s10, [#allocation4], %s232_s19, %s232_s19, %s233_s20  }
  0x13   :  { %s234_s23 = smov [#allocation6]   ;;  %s181_s27 = scalar_lea.hbm %s300_s1, 256 }
  0x14   :  { %s27_s24 = sshll.u32 %s234_s23, 4  ;;  %p182_p8 = scmp.ne.s32.totalorder %s300_s1, %s181_s27  ;;  %s28_s24 = int_to_ptr.vmem [resolvable:$true] %s27_s24 }
  0x15   :  { %p185_p9 = scmp.lt.u32.totalorder %s181_s27, %s300_s1 }
  0x17   :  { %p187_p10 = pnand %p185_p9, %p182_p8 }
  0x19   :  { %190 = shalt.err (!%p187_p10)
}
  0x1a   :  { %s191_s4 = scalar_lea.vmem %s28_s24, 256  ;;  %p196_p12 = scmp.lt.s32.totalorder %s28_s24, %s28_s24 }
  0x1b   :  { %p192_p11 = scmp.ne.s32.totalorder %s28_s24, %s191_s4  ;;  %p197_p13 = scmp.lt.s32.totalorder %s191_s4, %s191_s4 }
  0x1d   :  { %p198_p0 = por %p197_p13, %p196_p12 }
  0x1f   :  { %p199_p1 = pnand %p198_p0, %p192_p11 }
  0x21   :  { %202 = shalt.err (!%p199_p1)
}
  0x22   :  { %33 = dma.hbm_to_vmem [thread:$0]  %s300_s1, 256, %s28_s24, [#allocation7], %s232_s19, %s232_s19, %s233_s20  }
  0x23   :  { %225 = dma.done.wait [#allocation4], 256  }
  0x24   :  { %226 = vsyncadd [#allocation4], 4294967040 }
  0x25   :  { %227 = dma.done.wait [#allocation7], 256  }
  0x26   :  { %228 = vsyncadd [#allocation7], 4294967040  ;;  %v48_v0 = vld [vmem:[#allocation6] sm:$0xff]  ;;  %vm52_vm0 = vcmask 130048   ;;  %v46_v1 = vld [vmem:[#allocation3] sm:$0xff]  ;;  %vm44_vm1 = vcmask 254976  }
  0x27   :  { %v49_v2 = vld [vmem:[#allocation6 + $0x8] sm:$0xff]  ;;  %v59_v3 = vmul.f32 %v48_v0, %v48_v0  ;;  %v50_v4 = vmul.f32 %v46_v1, %v46_v1  ;;  %v47_v6 = vld [vmem:[#allocation3 + $0x8] sm:$0xff]  ;;  %v235_v12 = vmov 0.0   ;;  %vm94_vm2 = vcmask 1041409   ;;  %s236_s1 = smov 16   ;;  %s237_s6 = smov [#allocation8]  }
  0x28   :  { %v60_v5 = vmul.f32 %v49_v2, %v49_v2  ;;  %v51_v7 = vmul.f32 %v47_v6, %v47_v6  ;;  %45 = vst.msk [vmem:[#allocation2] sm:$0x3] %vm44_vm1, %v235_v12  ;;  %vm98_vm3 = vcmask 123904   ;;  %vm124_vm4 = vcmask 255104   ;;  %s138_s7 = sshll.u32 %s237_s6, 4  ;;  %s139_s7 = int_to_ptr.vmem [resolvable:$true] %s138_s7 }
  0x29   :  { %v61_v8 = vsel %vm52_vm0, %v59_v3, 0.0  ;;  %v53_v9 = vsel %vm52_vm0, %v50_v4, 0.0  ;;  %s203_s8 = scalar_lea.vmem %s139_s7, 32  ;;  %p208_p3 = scmp.lt.s32.totalorder %s139_s7, %s139_s7 }
  0x2a   :  { %62 = vadd.xlane.f32.xlu1 %v61_v8  ;;  %54 = vadd.xlane.f32.xlu0 %v53_v9  ;;  %v64_v10 = vsel %vm52_vm0, %v60_v5, 0.0  ;;  %v56_v11 = vsel %vm52_vm0, %v51_v7, 0.0  ;;  %p204_p2 = scmp.ne.s32.totalorder %s139_s7, %s203_s8  ;;  %p209_p4 = scmp.lt.s32.totalorder %s203_s8, %s203_s8 }
  0x2c   :  { %p210_p5 = por %p209_p4, %p208_p3 }
  0x2e   :  { %65 = vadd.xlane.f32.xlu1 %v64_v10  ;;  %57 = vadd.xlane.f32.xlu0 %v56_v11  ;;  %p211_p6 = pnand %p210_p5, %p204_p2 }
  0x2f   :  { %v91_v57 = vld [vmem:[#allocation2] sm:$0x3] }
  0xb7   :  { %v63_v13 = vpop.xlane.xlu1 %62  ;;  %v55_v14 = vpop.xlane.xlu0 %54 }
  0xb8   :  { %v67_v15 = vadd.f32 %v63_v13, %v55_v14 }
  0xba   :  { %v69_v16 = vmax.f32 %v67_v15, 1e-24 }
  0xbb   :  { %v66_v17 = vpop.xlane.xlu1 %65  ;;  %v58_v18 = vpop.xlane.xlu0 %57 }
  0xbc   :  { %155 = vrsqrt.f32 %v69_v16  ;;  %v68_v19 = vadd.f32 %v66_v17, %v58_v18 }
  0xbe   :  { %v70_v20 = vmax.f32 %v68_v19, 1e-24 }
  0xc0   :  { %157 = vrsqrt.f32 %v70_v20 }
  0xc6   :  { %v156_v21 = vpop.eup %155 }
  0xc7   :  { %v73_v22 = vmul.f32 0.125, %v156_v21 }
  0xc9   :  { %v75_v23 = vmul.f32 %v73_v22, %v46_v1  ;;  %v100_v24 = vmul.f32 %v73_v22, %v48_v0 }
  0xca   :  { %v158_v25 = vpop.eup %157 }
  0xcb   :  { %v77_v26 = vsel %vm52_vm0, %v75_v23, 0.0  ;;  %v102_v27 = vsel %vm52_vm0, %v100_v24, 0.0  ;;  %v74_v28 = vmul.f32 0.125, %v158_v25 }
  0xcc   :  { %v78_v29 = vrot.slane %v77_v26, 4  ;;  %v103_v30 = vrot.slane %v102_v27, 4 }
  0xcd   :  { %v76_v31 = vmul.f32 %v74_v28, %v47_v6  ;;  %v101_v32 = vmul.f32 %v74_v28, %v49_v2 }
  0xce   :  { %v79_v33 = vadd.f32 %v78_v29, %v77_v26  ;;  %v104_v34 = vadd.f32 %v103_v30, %v102_v27 }
  0xcf   :  { %v84_v35 = vsel %vm52_vm0, %v76_v31, 0.0  ;;  %v109_v36 = vsel %vm52_vm0, %v101_v32, 0.0 }
  0xd0   :  { %v80_v37 = vrot.slane %v79_v33, 2  ;;  %v85_v38 = vrot.slane %v84_v35, 4  ;;  %v110_v39 = vrot.slane %v109_v36, 4  ;;  %v105_v40 = vrot.slane %v104_v34, 2 }
  0xd2   :  { %v81_v41 = vadd.f32 %v80_v37, %v79_v33  ;;  %v86_v42 = vadd.f32 %v85_v38, %v84_v35  ;;  %v111_v43 = vadd.f32 %v110_v39, %v109_v36  ;;  %v106_v44 = vadd.f32 %v105_v40, %v104_v34 }
  0xd4   :  { %v87_v45 = vrot.slane %v86_v42, 2  ;;  %v112_v46 = vrot.slane %v111_v43, 2  ;;  %v82_v48 = vrot.slane %v81_v41, 1  ;;  %v107_v49 = vrot.slane %v106_v44, 1 }
  0xd6   :  { %v88_v47 = vadd.f32 %v87_v45, %v86_v42  ;;  %v113_v50 = vadd.f32 %v112_v46, %v111_v43  ;;  %v83_v53 = vadd.f32 %v82_v48, %v81_v41  ;;  %v108_v54 = vadd.f32 %v107_v49, %v106_v44 }
  0xd8   :  { %v114_v51 = vrot.slane %v113_v50, 1  ;;  %v89_v52 = vrot.slane %v88_v47, 1 }
  0xda   :  { %v115_v55 = vadd.f32 %v114_v51, %v113_v50  ;;  %v90_v56 = vadd.f32 %v89_v52, %v88_v47 }
  0xdc   :  { %v119_v58 = vsel %vm94_vm2, %v115_v55, %v108_v54  ;;  %v95_v59 = vsel %vm94_vm2, %v90_v56, %v83_v53 }
  0xdd   :  { %120 = vrot.lane.b32.xlu0 %v119_v58, %s236_s1  ;;  %v97_v60 = vadd.f32 %v95_v59, %v91_v57 }
  0xdf   :  { %99 = vst.msk [vmem:[#allocation2] sm:$0x3] %vm98_vm3, %v97_v60 }
  0xe6   :  { %v116_v62 = vld [vmem:[#allocation2] sm:$0x3] }
 0x14f   :  { %v121_v61 = vpop.permute.xlu0 %120 }
 0x150   :  { %v123_v63 = vadd.f32 %v121_v61, %v116_v62 }
 0x152   :  { %125 = vst.msk [vmem:[#allocation2] sm:$0x3] %vm124_vm4, %v123_v63 }
 0x159   :  { %v129_v0 = vld [vmem:[#allocation2] sm:$0x3] }
 0x15a   :  { %131 = vst.msk [vmem:[#allocation8] sm:$0x3] %vm44_vm1, %v129_v0 }
 0x15b   :  { %214 = shalt.err (!%p211_p6)
}
 0x15c   :  { %s215_s11 = scalar_lea.hbm %s301_s2, 32 }
 0x15d   :  { %p216_p7 = scmp.ne.s32.totalorder %s301_s2, %s215_s11  ;;  %p219_p8 = scmp.lt.u32.totalorder %s215_s11, %s301_s2 }
 0x15f   :  { %p221_p9 = pnand %p219_p8, %p216_p7 }
 0x161   :  { %224 = shalt.err (!%p221_p9)
}
 0x162   :  { %141 = dma.vmem_to_hbm [thread:$0]  %s139_s7, 32, %s301_s2, [#allocation5]  }
 0x163   :  { %229 = dma.done.wait [#allocation5], 32  }
 0x164   :  { %230 = vsyncadd [#allocation5], 4294967264 }
 0x165   :  { %145 = vsyncpa [#allocation4], 1 }
 0x166   :  { %146 = vsyncpa [#allocation7], 1 }
 0x167   :  { %147 = vsyncpa [#allocation5], 1 }

</bundles_post_ra>
